<compile_context>
chip_gen: v7x
topology: tpu7x:2x2x1
jax: 0.10.0
libtpu: 0.0.40
codegen_flags: <defaults>
</compile_context>

<pallas_src>
from typing import NamedTuple

import jax
import jax.numpy as jnp
from jax.experimental import pallas as pl
from jax.experimental.pallas import tpu as pltpu

LANE = 128
SUBLANE = 8


# --------------------------------------------------------------------------- #
# Shapes / packing helpers (run once per parameter update, not per forward)
# --------------------------------------------------------------------------- #

def _mlp_layer_dims(state_dim, action_dim, n_layers, first_hidden_dim):
    """Reproduces DQN.make_mlp dimension logic."""
    dims = [state_dim]
    in_dim = state_dim
    for layer in range(n_layers):
        hidden_dim = first_hidden_dim if layer == 0 else max(in_dim // 2, 16)
        dims.append(hidden_dim)
        in_dim = hidden_dim
    dims.append(action_dim)
    return dims


def _round_up(x, m):
    return ((x + m - 1) // m) * m


def _num_tensorcores():
    """TensorCores addressable on the default device (v5e/v6e: 1, v7x: 2)."""
    try:
        n = getattr(jax.devices()[0], "num_cores", None)
        return max(1, int(n)) if n else 1
    except Exception:
        return 1


def _pick_batch_tiling(batch, tile_b=None):
    """Rows per grid step (multiple of 8) and padded batch size."""
    b_pad8 = _round_up(max(batch, 1), SUBLANE)
    if tile_b is None:
        # One grid step per TensorCore; cap rows/step to limit vreg pressure.
        steps = _num_tensorcores()
        tile_b = _round_up(pl.cdiv(b_pad8, steps), SUBLANE)
        tile_b = min(tile_b, 512)
    else:
        tile_b = _round_up(min(int(tile_b), b_pad8), SUBLANE)
    tile_b = max(tile_b, SUBLANE)
    b_pad = _round_up(b_pad8, tile_b)
    return tile_b, b_pad


class PackedMLP(NamedTuple):
    w_stack: jax.Array   # [n_linear, d_pad, d_pad] bf16 (zero padded)
    b_stack: jax.Array   # [round_up(n_linear, 8), d_pad] f32 (zero padded)
    n_linear: int
    d_pad: int
    state_dim: int
    action_dim: int


def pack_mlp_params(weights, biases, state_dim):
    """Pack per-layer params into stacked, lane-dense, MXU-friendly buffers.

    weights: list of [in_dim, out_dim] f32 (transpose of torch's [out, in])
    biases:  list of [out_dim] or [1, out_dim] f32
    Zero padding is numerically exact for the forward pass.
    """
    n_linear = len(weights)
    action_dim = weights[-1].shape[1]
    all_dims = [state_dim] + [w.shape[1] for w in weights]
    d_pad = _round_up(max(all_dims), LANE)

    w_stack = jnp.stack([
        jnp.pad(w.astype(jnp.bfloat16),
                ((0, d_pad - w.shape[0]), (0, d_pad - w.shape[1])))
        for w in weights
    ])

    b_rows = []
    for w, b in zip(weights, biases):
        out_dim = w.shape[1]
        b_flat = jnp.reshape(b, (-1,)).astype(jnp.float32)
        b_rows.append(jnp.pad(b_flat, (0, d_pad - out_dim)))
    b_stack = jnp.stack(b_rows)
    b_stack = jnp.pad(b_stack, ((0, _round_up(n_linear, SUBLANE) - n_linear), (0, 0)))

    return PackedMLP(w_stack, b_stack, n_linear, d_pad, state_dim, action_dim)


# --------------------------------------------------------------------------- #
# Kernels
# --------------------------------------------------------------------------- #

def _mlp_apply(h_bf16, w_ref, b_ref, n_linear):
    """Shared fused MLP body: bf16 matmuls on the MXU, f32 bias/ReLU epilogue."""
    h = h_bf16                                             # (tile_b, d_pad) bf16
    acc = None
    for li in range(n_linear):
        w = w_ref[li]                                      # (d_pad, d_pad) bf16
        b = b_ref[li:li + 1, :]                            # (1, d_pad) f32
        acc = jnp.dot(h, w, preferred_element_type=jnp.float32) + b
        if li < n_linear - 1:
            acc = jnp.maximum(acc, 0.0)                    # ReLU in f32 (v5e-safe)
            h = acc.astype(jnp.bfloat16)
    return acc                                             # (tile_b, d_pad) f32


def _make_forward_kernel(n_linear):
    def kernel(x_ref, w_ref, b_ref, o_ref):
        o_ref[...] = _mlp_apply(x_ref[...], w_ref, b_ref, n_linear)
    return kernel


def _make_fused_td_kernel(n_linear, action_dim, gamma):
    """Online forward + Q(s,a) gather + target forward + max + TD target."""
    def kernel(s_ref, ns_ref, a1h_ref, r_ref, d_ref,
               w_ref, b_ref, wt_ref, bt_ref,
               qsa_ref, tgt_ref):
        # Q(s, a): one-hot gather over the action lanes (padded lanes are 0).
        q = _mlp_apply(s_ref[...], w_ref, b_ref, n_linear)
        qsa_ref[...] = jnp.sum(q * a1h_ref[...], axis=-1, keepdims=True)

        # max_a' Q_target(s', a'): mask padded action lanes to -inf so the
        # zero-padded columns can never win the max.
        qt = _mlp_apply(ns_ref[...], wt_ref, bt_ref, n_linear)
        lane = jax.lax.broadcasted_iota(jnp.int32, qt.shape, 1)
        qt = jnp.where(lane < action_dim, qt, -jnp.inf)
        v_next = jnp.max(qt, axis=-1, keepdims=True)

        tgt_ref[...] = v_next * (gamma * (1.0 - d_ref[...])) + r_ref[...]
    return kernel


# --------------------------------------------------------------------------- #
# Wrappers
# --------------------------------------------------------------------------- #

def dqn_forward_pallas(x, packed: PackedMLP, *, tile_b=None):
    """DQN.forward / self.q_network(state): [B, state_dim] -> [B, action_dim]."""
    B, state_dim = x.shape
    assert state_dim == packed.state_dim
    d_pad = packed.d_pad
    tile_b, b_pad = _pick_batch_tiling(B, tile_b)

    # Single fused pad+astype for the batch (packing of params is pre-hoisted).
    x_p = jnp.pad(x.astype(jnp.bfloat16), ((0, b_pad - B), (0, d_pad - state_dim)))

    out = pl.pallas_call(
        _make_forward_kernel(packed.n_linear),
        out_shape=jax.ShapeDtypeStruct((b_pad, d_pad), jnp.float32),
        grid_spec=pltpu.PrefetchScalarGridSpec(
            num_scalar_prefetch=0,
            grid=(b_pad // tile_b,),
            in_specs=[
                pl.BlockSpec((tile_b, d_pad), lambda i: (i, 0)),       # states
                pl.BlockSpec(packed.w_stack.shape, lambda i: (0, 0, 0)),  # weights
                pl.BlockSpec(packed.b_stack.shape, lambda i: (0, 0)),     # biases
            ],
            out_specs=pl.BlockSpec((tile_b, d_pad), lambda i: (i, 0)),
        ),
        compiler_params=pltpu.CompilerParams(
            dimension_semantics=("parallel",),
        ),
    )(x_p, packed.w_stack, packed.b_stack)

    return out[:B, :packed.action_dim]


def dqn_td_fused_pallas(states, next_states, actions, rewards, dones,
                        online: PackedMLP, target: PackedMLP, gamma,
                        *, tile_b=None):
    """Fused optimization_step value path.

    Returns (q_sa, td_target), each [B], where
      q_sa      = Q_online(s)[a]
      td_target = gamma * (1 - done) * max_a' Q_target(s') + r
    """
    B, state_dim = states.shape
    assert state_dim == online.state_dim == target.state_dim
    assert online.d_pad == target.d_pad and online.n_linear == target.n_linear
    d_pad = online.d_pad
    action_dim = online.action_dim
    tile_b, b_pad = _pick_batch_tiling(B, tile_b)

    def pad_feat(a):
        return jnp.pad(a.astype(jnp.bfloat16),
                       ((0, b_pad - B), (0, d_pad - state_dim)))

    s_p = pad_feat(states)
    ns_p = pad_feat(next_states)
    a1h = jnp.pad(jax.nn.one_hot(actions, d_pad, dtype=jnp.float32),
                  ((0, b_pad - B), (0, 0)))
    r_p = jnp.pad(rewards.astype(jnp.float32).reshape(-1, 1), ((0, b_pad - B), (0, 0)))
    d_p = jnp.pad(dones.astype(jnp.float32).reshape(-1, 1), ((0, b_pad - B), (0, 0)))

    qsa, tgt = pl.pallas_call(
        _make_fused_td_kernel(online.n_linear, action_dim, float(gamma)),
        out_shape=(jax.ShapeDtypeStruct((b_pad, 1), jnp.float32),
                   jax.ShapeDtypeStruct((b_pad, 1), jnp.float32)),
        grid_spec=pltpu.PrefetchScalarGridSpec(
            num_scalar_prefetch=0,
            grid=(b_pad // tile_b,),
            in_specs=[
                pl.BlockSpec((tile_b, d_pad), lambda i: (i, 0)),          # states
                pl.BlockSpec((tile_b, d_pad), lambda i: (i, 0)),          # next states
                pl.BlockSpec((tile_b, d_pad), lambda i: (i, 0)),          # action one-hot
                pl.BlockSpec((tile_b, 1), lambda i: (i, 0)),              # rewards
                pl.BlockSpec((tile_b, 1), lambda i: (i, 0)),              # dones
                pl.BlockSpec(online.w_stack.shape, lambda i: (0, 0, 0)),  # online W
                pl.BlockSpec(online.b_stack.shape, lambda i: (0, 0)),     # online b
                pl.BlockSpec(target.w_stack.shape, lambda i: (0, 0, 0)),  # target W
                pl.BlockSpec(target.b_stack.shape, lambda i: (0, 0)),     # target b
            ],
            out_specs=[
                pl.BlockSpec((tile_b, 1), lambda i: (i, 0)),
                pl.BlockSpec((tile_b, 1), lambda i: (i, 0)),
            ],
        ),
        compiler_params=pltpu.CompilerParams(
            dimension_semantics=("parallel",),
        ),
    )(s_p, ns_p, a1h, r_p, d_p,
      online.w_stack, online.b_stack, target.w_stack, target.b_stack)

    return qsa[:B, 0], tgt[:B, 0]


# --------------------------------------------------------------------------- #
# Pure-JAX references & param init
# --------------------------------------------------------------------------- #

def dqn_forward_ref(x, weights, biases, compute_dtype=jnp.float32):
    """Pure-JAX reference. compute_dtype=bfloat16 mirrors the kernel exactly."""
    n_linear = len(weights)
    h = x
    for li, (w, b) in enumerate(zip(weights, biases)):
        h = jnp.dot(h.astype(compute_dtype), w.astype(compute_dtype),
                    preferred_element_type=jnp.float32) + jnp.reshape(b, (1, -1))
        if li < n_linear - 1:
            h = jnp.maximum(h, 0.0)
    return h


def init_dqn_params(key, dims):
    """Deterministic parameter init (uniform, torch-Linear-like scale)."""
    weights, biases = [], []
    for in_dim, out_dim in zip(dims[:-1], dims[1:]):
        key, kw, kb = jax.random.split(key, 3)
        bound = 1.0 / (in_dim ** 0.5)
        w = jax.random.uniform(kw, (in_dim, out_dim), jnp.float32, -bound, bound)
        b = jax.random.uniform(kb, (1, out_dim), jnp.float32, -bound, bound)
        weights.append(w)
        biases.append(b)
    return weights, biases


# --------------------------------------------------------------------------- #
# Demo / self-check
# --------------------------------------------------------------------------- #

if __name__ == "__main__":
    # Small shapes consistent with DQN(state_dim, action_dim, n_layers, ...).
    state_dim, action_dim, n_layers, first_hidden_dim = 16, 5, 2, 32
    batch = 32
    gamma = 0.99

    dims = _mlp_layer_dims(state_dim, action_dim, n_layers, first_hidden_dim)
    # dims == [16, 32, 16, 5]

    key = jax.random.PRNGKey(0)
    key, kx, kn, ka, kr, kd, kq, kt = jax.random.split(key, 8)
    states = jax.random.normal(kx, (batch, state_dim), jnp.float32)
    next_states = jax.random.normal(kn, (batch, state_dim), jnp.float32)
    actions = jax.random.randint(ka, (batch,), 0, action_dim)
    rewards = jax.random.normal(kr, (batch,), jnp.float32)
    dones = (jax.random.uniform(kd, (batch,)) < 0.2).astype(jnp.float32)

    q_w, q_b = init_dqn_params(kq, dims)     # online network
    t_w, t_b = init_dqn_params(kt, dims)     # target network

    # Pack params once (per parameter / target update), reuse across calls.
    online = pack_mlp_params(q_w, q_b, state_dim)
    target = pack_mlp_params(t_w, t_b, state_dim)

    # --- q_network forward pass (DQN.forward) --------------------------------
    q_pallas = dqn_forward_pallas(states, online)
    jax.block_until_ready(q_pallas)
    assert q_pallas.shape == (batch, action_dim)

    q_ref_bf16 = dqn_forward_ref(states, q_w, q_b, compute_dtype=jnp.bfloat16)
    q_ref_f32 = dqn_forward_ref(states, q_w, q_b, compute_dtype=jnp.float32)
    assert jnp.allclose(q_pallas, q_ref_bf16, atol=2e-3, rtol=2e-3), \
        "forward mismatch vs bf16 reference"
    assert jnp.allclose(q_pallas, q_ref_f32, atol=5e-2, rtol=5e-2), \
        "forward mismatch vs f32 reference"

    # --- fused online+target forward / gather / TD-target --------------------
    q_sa, td_target = dqn_td_fused_pallas(states, next_states, actions,
                                          rewards, dones, online, target, gamma)
    jax.block_until_ready((q_sa, td_target))
    assert q_sa.shape == (batch,) and td_target.shape == (batch,)

    qt_ref = dqn_forward_ref(next_states, t_w, t_b, compute_dtype=jnp.bfloat16)
    q_sa_ref = jnp.take_along_axis(q_ref_bf16, actions[:, None], axis=1)[:, 0]
    td_ref = jnp.max(qt_ref, axis=1) * gamma * (1.0 - dones) + rewards
    assert jnp.allclose(q_sa, q_sa_ref, atol=2e-3, rtol=2e-3), \
        "fused Q(s,a) mismatch vs reference"
    assert jnp.allclose(td_target, td_ref, atol=2e-3, rtol=2e-3), \
        "fused TD-target mismatch vs reference"

    print("KERNEL_OK")
</pallas_src>

<mosaic_0001>
module attributes {stable_mosaic.version = 11 : i64} {
  func.func @kernel(%arg0: i32, %arg1: memref<32x128xbf16, #tpu.memory_space<vmem>>, %arg2: memref<3x128x128xbf16, #tpu.memory_space<vmem>>, %arg3: memref<8x128xf32, #tpu.memory_space<vmem>>, %arg4: memref<32x128xf32, #tpu.memory_space<vmem>>) attributes {dimension_semantics = [#tpu.dimension_semantics<parallel>], iteration_bounds = array<i64: 1>, scalar_prefetch = 0 : i64, scratch_operands = 0 : i64, tpu.core_type = #tpu.core_type<tc>, window_params = [{transform_indices = @transform_0, window_bounds = array<i64: 32, 128>}, {pipeline_mode = #tpu.pipeline_mode<synchronous>, transform_indices = @transform_1, window_bounds = array<i64: 3, 128, 128>}, {pipeline_mode = #tpu.pipeline_mode<synchronous>, transform_indices = @transform_2, window_bounds = array<i64: 8, 128>}, {transform_indices = @transform_3, window_bounds = array<i64: 32, 128>}]} {
    %c0 = arith.constant 0 : index
    %c0_0 = arith.constant 0 : index
    %0 = vector.load %arg1[%c0, %c0_0] : memref<32x128xbf16, #tpu.memory_space<vmem>>, vector<32x128xbf16>
    %c0_1 = arith.constant 0 : index
    %c0_2 = arith.constant 0 : index
    %c0_3 = arith.constant 0 : index
    %1 = vector.load %arg2[%c0_1, %c0_2, %c0_3] : memref<3x128x128xbf16, #tpu.memory_space<vmem>>, vector<1x128x128xbf16>
    %2 = vector.shape_cast %1 : vector<1x128x128xbf16> to vector<128x128xbf16>
    %c0_4 = arith.constant 0 : index
    %c0_5 = arith.constant 0 : index
    %3 = vector.load %arg3[%c0_4, %c0_5] : memref<8x128xf32, #tpu.memory_space<vmem>>, vector<1x128xf32>
    %cst = arith.constant dense<0.000000e+00> : vector<32x128xf32>
    %4 = tpu.matmul %0, %2, %cst {dimension_numbers = #tpu.dot_dimension_numbers<[1], [0], [0], [1], [0, 0, 1, 1], [], []>} : vector<32x128xbf16>, vector<128x128xbf16>, vector<32x128xf32> -> vector<32x128xf32>
    %5 = vector.broadcast %3 : vector<1x128xf32> to vector<32x128xf32>
    %6 = arith.addf %4, %5 : vector<32x128xf32>
    %cst_6 = arith.constant 0.000000e+00 : f32
    %7 = vector.broadcast %cst_6 : f32 to vector<32x128xf32>
    %8 = arith.maximumf %6, %7 : vector<32x128xf32>
    %9 = arith.truncf %8 : vector<32x128xf32> to vector<32x128xbf16>
    %c1 = arith.constant 1 : index
    %c0_7 = arith.constant 0 : index
    %c0_8 = arith.constant 0 : index
    %10 = vector.load %arg2[%c1, %c0_7, %c0_8] : memref<3x128x128xbf16, #tpu.memory_space<vmem>>, vector<1x128x128xbf16>
    %11 = vector.shape_cast %10 : vector<1x128x128xbf16> to vector<128x128xbf16>
    %c1_9 = arith.constant 1 : index
    %c0_10 = arith.constant 0 : index
    %12 = vector.load %arg3[%c1_9, %c0_10] : memref<8x128xf32, #tpu.memory_space<vmem>>, vector<1x128xf32>
    %cst_11 = arith.constant dense<0.000000e+00> : vector<32x128xf32>
    %13 = tpu.matmul %9, %11, %cst_11 {dimension_numbers = #tpu.dot_dimension_numbers<[1], [0], [0], [1], [0, 0, 1, 1], [], []>} : vector<32x128xbf16>, vector<128x128xbf16>, vector<32x128xf32> -> vector<32x128xf32>
    %14 = vector.broadcast %12 : vector<1x128xf32> to vector<32x128xf32>
    %15 = arith.addf %13, %14 : vector<32x128xf32>
    %cst_12 = arith.constant 0.000000e+00 : f32
    %16 = vector.broadcast %cst_12 : f32 to vector<32x128xf32>
    %17 = arith.maximumf %15, %16 : vector<32x128xf32>
    %18 = arith.truncf %17 : vector<32x128xf32> to vector<32x128xbf16>
    %c2 = arith.constant 2 : index
    %c0_13 = arith.constant 0 : index
    %c0_14 = arith.constant 0 : index
    %19 = vector.load %arg2[%c2, %c0_13, %c0_14] : memref<3x128x128xbf16, #tpu.memory_space<vmem>>, vector<1x128x128xbf16>
    %20 = vector.shape_cast %19 : vector<1x128x128xbf16> to vector<128x128xbf16>
    %c2_15 = arith.constant 2 : index
    %c0_16 = arith.constant 0 : index
    %21 = vector.load %arg3[%c2_15, %c0_16] : memref<8x128xf32, #tpu.memory_space<vmem>>, vector<1x128xf32>
    %cst_17 = arith.constant dense<0.000000e+00> : vector<32x128xf32>
    %22 = tpu.matmul %18, %20, %cst_17 {dimension_numbers = #tpu.dot_dimension_numbers<[1], [0], [0], [1], [0, 0, 1, 1], [], []>} : vector<32x128xbf16>, vector<128x128xbf16>, vector<32x128xf32> -> vector<32x128xf32>
    %23 = vector.broadcast %21 : vector<1x128xf32> to vector<32x128xf32>
    %24 = arith.addf %22, %23 : vector<32x128xf32>
    %c0_18 = arith.constant 0 : index
    %c0_19 = arith.constant 0 : index
    %25 = vector.load %arg4[%c0_18, %c0_19] : memref<32x128xf32, #tpu.memory_space<vmem>>, vector<32x128xf32>
    tpu.vector_store %arg4[%c0_18, %c0_19], %24 {strides = array<i32>} : memref<32x128xf32, #tpu.memory_space<vmem>>, vector<32x128xf32>,
    return
  }
  func.func @transform_0(%arg0: i32) -> (i32, i32) {
    %c0_i32 = arith.constant 0 : i32
    %c0_i32_0 = arith.constant 0 : i32
    return %arg0, %c0_i32 : i32, i32
  }
  func.func @transform_1(%arg0: i32) -> (i32, i32, i32) {
    %c0_i32 = arith.constant 0 : i32
    %c0_i32_0 = arith.constant 0 : i32
    %c0_i32_1 = arith.constant 0 : i32
    %c0_i32_2 = arith.constant 0 : i32
    return %c0_i32, %c0_i32_0, %c0_i32_1 : i32, i32, i32
  }
  func.func @transform_2(%arg0: i32) -> (i32, i32) {
    %c0_i32 = arith.constant 0 : i32
    %c0_i32_0 = arith.constant 0 : i32
    %c0_i32_1 = arith.constant 0 : i32
    return %c0_i32, %c0_i32_0 : i32, i32
  }
  func.func @transform_3(%arg0: i32) -> (i32, i32) {
    %c0_i32 = arith.constant 0 : i32
    %c0_i32_0 = arith.constant 0 : i32
    return %arg0, %c0_i32 : i32, i32
  }
}

</mosaic_0001>

<bundles_post_ra>
// kernel: tpu_custom_call.1
= control target key start
LH: loop header
LB: loop body
LE: loop exit
PB: predicated region body
PF: predicated region fallthrough
CT: control target
= control target key end

     0   :  { %8 = vsyncpa [#allocation3], 0  ;;  %s791_s0 = inlined_call_operand.hbm [shape: bf16[32,128], index: 0, kind: input, shape index: {}]   ;;  %s792_s1 = inlined_call_operand.hbm [shape: bf16[3,128,128], index: 1, kind: input, shape index: {}]   ;;  %s793_s2 = inlined_call_operand.hbm [shape: f32[8,128], index: 2, kind: input, shape index: {}]   ;;  %s794_s3 = inlined_call_operand.hbm [shape: f32[32,128], index: 3, kind: output, shape index: {}]  }
   0x1   :  { %9 = vsyncpa [#allocation6], 0 }
   0x2   :  { %10 = vsyncpa [#allocation4], 0  ;;  %s708_s12 = smov [#allocation5]   ;;  %s709_s14 = smov [#allocation2]  }
   0x3   :  { %s28_s13 = sshll.u32 %s708_s12, 4  ;;  %s16_s15 = sshll.u32 %s709_s14, 4  ;;  %s29_s13 = int_to_ptr.vmem [resolvable:$true] %s28_s13  ;;  %s736_s15 = int_to_ptr.vmem [resolvable:$true] %s16_s15 }
   0x4   :  { %s614_s18 = scalar_lea.hbm %s792_s1, 3072 }
   0x5   :  { %p615_p0 = scmp.ne.s32.totalorder %s792_s1, %s614_s18  ;;  %p618_p1 = scmp.lt.u32.totalorder %s614_s18, %s792_s1 }
   0x7   :  { %p620_p2 = pnand %p618_p1, %p615_p0 }
   0x9   :  { %623 = shalt.err (!%p620_p2)
}
   0xa   :  { %s624_s23 = scalar_lea.vmem %s29_s13, 3072  ;;  %p629_p4 = scmp.lt.s32.totalorder %s29_s13, %s29_s13 }
   0xb   :  { %p625_p3 = scmp.ne.s32.totalorder %s29_s13, %s624_s23  ;;  %p630_p5 = scmp.lt.s32.totalorder %s624_s23, %s624_s23 }
   0xd   :  { %p631_p6 = por %p630_p5, %p629_p4 }
   0xf   :  { %p632_p7 = pnand %p631_p6, %p625_p3 }
  0x11   :  { %635 = shalt.err (!%p632_p7)
}
  0x12   :  { %s710_s24 = smov 64   ;;  %s711_s25 = smov 4  }
  0x13   :  { %34 = dma.hbm_to_vmem [thread:$0]  %s792_s1, 3072, %s29_s13, [#allocation6], %s710_s24, %s710_s24, %s711_s25  }
  0x14   :  { %s636_s30 = scalar_lea.hbm %s791_s0, 256 }
  0x15   :  { %p637_p8 = scmp.ne.s32.totalorder %s791_s0, %s636_s30  ;;  %p640_p9 = scmp.lt.u32.totalorder %s636_s30, %s791_s0 }
  0x17   :  { %p642_p10 = pnand %p640_p9, %p637_p8 }
  0x19   :  { %645 = shalt.err (!%p642_p10)
}
  0x1a   :  { %s646_s8 = scalar_lea.vmem %s736_s15, 256  ;;  %p651_p12 = scmp.lt.s32.totalorder %s736_s15, %s736_s15 }
  0x1b   :  { %p647_p11 = scmp.ne.s32.totalorder %s736_s15, %s646_s8  ;;  %p652_p13 = scmp.lt.s32.totalorder %s646_s8, %s646_s8 }
  0x1d   :  { %p653_p0 = por %p652_p13, %p651_p12 }
  0x1f   :  { %p654_p1 = pnand %p653_p0, %p647_p11 }
  0x21   :  { %657 = shalt.err (!%p654_p1)
}
  0x22   :  { %22 = dma.hbm_to_vmem [thread:$0]  %s791_s0, 256, %s736_s15, [#allocation3], %s710_s24, %s710_s24, %s711_s25  }
  0x23   :  { %s712_s10 = smov [#allocation7]   ;;  %s658_s14 = scalar_lea.hbm %s793_s2, 128 }
  0x24   :  { %s41_s11 = sshll.u32 %s712_s10, 4  ;;  %p659_p2 = scmp.ne.s32.totalorder %s793_s2, %s658_s14  ;;  %s42_s11 = int_to_ptr.vmem [resolvable:$true] %s41_s11 }
  0x25   :  { %p662_p3 = scmp.lt.u32.totalorder %s658_s14, %s793_s2 }
  0x27   :  { %p664_p4 = pnand %p662_p3, %p659_p2 }
  0x29   :  { %667 = shalt.err (!%p664_p4)
}
  0x2a   :  { %s668_s20 = scalar_lea.vmem %s42_s11, 128  ;;  %p673_p6 = scmp.lt.s32.totalorder %s42_s11, %s42_s11 }
  0x2b   :  { %p669_p5 = scmp.ne.s32.totalorder %s42_s11, %s668_s20  ;;  %p674_p7 = scmp.lt.s32.totalorder %s668_s20, %s668_s20 }
  0x2d   :  { %p675_p8 = por %p674_p7, %p673_p6 }
  0x2f   :  { %p676_p9 = pnand %p675_p8, %p669_p5 }
  0x31   :  { %679 = shalt.err (!%p676_p9)
}
  0x32   :  { %44 = dma.hbm_to_vmem [thread:$0]  %s793_s2, 128, %s42_s11, [#allocation6]  }
  0x33   :  { %702 = dma.done.wait [#allocation3], 256  }
  0x34   :  { %703 = vsyncadd [#allocation3], 4294967040 }
  0x35   :  { %704 = dma.done.wait [#allocation6], 3200  }
  0x36   :  { %705 = vsyncadd [#allocation6], 4294964096  ;;  %v588_v0 = vld [vmem:[#allocation5] sm:$0xff]   ;;  %v589_v1 = vld [vmem:[#allocation5 + $0x8] sm:$0xff]   ;;  %s713_s2 = smov [#allocation8]  }
  0x37   :  { %520 = vmatprep.subr.bf16.mxu0 %v588_v0  ;;  %v590_v2 = vld [vmem:[#allocation5 + $0x10] sm:$0xff]   ;;  %v591_v3 = vld [vmem:[#allocation5 + $0x18] sm:$0xff]   ;;  %v598_v5 = vld [vmem:[#allocation5 + $0x40] sm:$0xff]   ;;  %s448_s21 = sshll.u32 %s713_s2, 4  ;;  %s449_s21 = int_to_ptr.vmem [resolvable:$true] %s448_s21 }
  0x38   :  { %521 = vmatpush3.bf16.msra.mxu0 %v588_v0  ;;  %v596_v4 = vld [vmem:[#allocation2] sm:$0xff]   ;;  %v599_v6 = vld [vmem:[#allocation5 + $0x48] sm:$0xff]   ;;  %v592_v7 = vld [vmem:[#allocation5 + $0x20] sm:$0xff]   ;;  %540 = vmatprep.subr.bf16.mxu1 %v598_v5  ;;  %s680_s22 = scalar_lea.vmem %s449_s21, 512  ;;  %p685_p11 = scmp.lt.s32.totalorder %s449_s21, %s449_s21 }
  0x39   :  { %522 = vmatprep.subr.bf16.mxu0 %v589_v1  ;;  %536 = vmatprep.mubr.bf16.mxu0 %v596_v4  ;;  %v600_v8 = vld [vmem:[#allocation5 + $0x50] sm:$0xff]   ;;  %v593_v9 = vld [vmem:[#allocation5 + $0x28] sm:$0xff]   ;;  %v601_v10 = vld [vmem:[#allocation5 + $0x58] sm:$0xff]   ;;  %p681_p10 = scmp.ne.s32.totalorder %s449_s21, %s680_s22  ;;  %p686_p12 = scmp.lt.s32.totalorder %s680_s22, %s680_s22 }
  0x3a   :  { %541 = vmatpush3.bf16.msra.mxu1 %v598_v5  ;;  %v594_v11 = vld [vmem:[#allocation5 + $0x30] sm:$0xff]   ;;  %v602_v12 = vld [vmem:[#allocation5 + $0x60] sm:$0xff]   ;;  %v595_v13 = vld [vmem:[#allocation5 + $0x38] sm:$0xff]  }
  0x3b   :  { %542 = vmatprep.subr.bf16.mxu1 %v599_v6  ;;  %v603_v14 = vld [vmem:[#allocation5 + $0x68] sm:$0xff]   ;;  %v597_v15 = vld [vmem:[#allocation2 + $0x8] sm:$0xff]   ;;  %v604_v16 = vld [vmem:[#allocation5 + $0x70] sm:$0xff]   ;;  %p687_p13 = por %p686_p12, %p685_p11 }
  0x3c   :  { %523 = vmatpush3.bf16.msra.mxu0 %v589_v1  ;;  %v605_v17 = vld [vmem:[#allocation5 + $0x78] sm:$0xff]   ;;  %v606_v18 = vld [vmem:[#allocation5 + $0x80] sm:$0xff]   ;;  %v607_v19 = vld [vmem:[#allocation5 + $0x88] sm:$0xff]  }
  0x3d   :  { %524 = vmatprep.subr.bf16.mxu0 %v590_v2  ;;  %v608_v20 = vld [vmem:[#allocation5 + $0x90] sm:$0xff]   ;;  %v609_v21 = vld [vmem:[#allocation5 + $0x98] sm:$0xff]   ;;  %v610_v22 = vld [vmem:[#allocation5 + $0xa0] sm:$0xff]   ;;  %p688_p0 = pnand %p687_p13, %p681_p10 }
  0x3e   :  { %543 = vmatpush3.bf16.msra.mxu1 %v599_v6  ;;  %v611_v23 = vld [vmem:[#allocation5 + $0xa8] sm:$0xff]   ;;  %v461_v24 = vld [vmem:[#allocation7] ss:$0 sm:$0xff]  ;;  %v612_v39 = vld [vmem:[#allocation5 + $0xb0] sm:$0xff]  }
  0x3f   :  { %544 = vmatprep.subr.bf16.mxu1 %v600_v8  ;;  %v613_v40 = vld [vmem:[#allocation5 + $0xb8] sm:$0xff]   ;;  %v472_v41 = vld [vmem:[#allocation7 + $0x1] ss:$0 sm:$0xff]  ;;  %v481_v56 = vld [vmem:[#allocation7 + $0x2] ss:$0 sm:$0xff] }
  0x40   :  { %525 = vmatpush3.bf16.msra.mxu0 %v590_v2 }
  0x41   :  { %526 = vmatprep.subr.bf16.mxu0 %v591_v3 }
  0x42   :  { %545 = vmatpush3.bf16.msra.mxu1 %v600_v8 }
  0x43   :  { %546 = vmatprep.subr.bf16.mxu1 %v601_v10 }
  0x44   :  { %527 = vmatpush3.bf16.msra.mxu0 %v591_v3 }
  0x45   :  { %528 = vmatprep.subr.bf16.mxu0 %v592_v7 }
  0x46   :  { %547 = vmatpush3.bf16.msra.mxu1 %v601_v10 }
  0x47   :  { %548 = vmatprep.subr.bf16.mxu1 %v602_v12 }
  0x48   :  { %529 = vmatpush3.bf16.msra.mxu0 %v592_v7 }
  0x49   :  { %530 = vmatprep.subr.bf16.mxu0 %v593_v9 }
  0x4a   :  { %549 = vmatpush3.bf16.msra.mxu1 %v602_v12 }
  0x4b   :  { %550 = vmatprep.subr.bf16.mxu1 %v603_v14 }
  0x4c   :  { %531 = vmatpush3.bf16.msra.mxu0 %v593_v9 }
  0x4d   :  { %532 = vmatprep.subr.bf16.mxu0 %v594_v11 }
  0x4e   :  { %551 = vmatpush3.bf16.msra.mxu1 %v603_v14 }
  0x4f   :  { %552 = vmatprep.subr.bf16.mxu1 %v604_v16 }
  0x50   :  { %533 = vmatpush3.bf16.msra.mxu0 %v594_v11 }
  0x51   :  { %534 = vmatprep.subr.bf16.mxu0 %v595_v13 }
  0x52   :  { %553 = vmatpush3.bf16.msra.mxu1 %v604_v16 }
  0x53   :  { %554 = vmatprep.subr.bf16.mxu1 %v605_v17 }
  0x54   :  { %535 = vmatpush3.bf16.msra.mxu0 %v595_v13 }
  0x55   :  { %560 = vmatprep.subr.bf16.mxu0 %v606_v18 }
  0x56   :  { %555 = vmatpush3.bf16.msra.mxu1 %v605_v17 }
  0x57   :  { %537 = vmatmul.mubr.bf16.vlgmr.msra.gmra.mrb[0].mxu0 %v597_v15 }
  0x58   :  { %561 = vmatpush3.bf16.msra.mxu0 %v606_v18 }
  0x59   :  { %562 = vmatprep.subr.bf16.mxu0 %v607_v19 }
  0x5c   :  { %563 = vmatpush3.bf16.msra.mxu0 %v607_v19 }
  0x5d   :  { %564 = vmatprep.subr.bf16.mxu0 %v608_v20 }
  0x60   :  { %565 = vmatpush3.bf16.msra.mxu0 %v608_v20 }
  0x61   :  { %566 = vmatprep.subr.bf16.mxu0 %v609_v21 }
  0x64   :  { %567 = vmatpush3.bf16.msra.mxu0 %v609_v21 }
  0x65   :  { %568 = vmatprep.subr.bf16.mxu0 %v610_v22 }
  0x68   :  { %569 = vmatpush3.bf16.msra.mxu0 %v610_v22 }
  0x69   :  { %570 = vmatprep.subr.bf16.mxu0 %v611_v23 }
  0x6c   :  { %571 = vmatpush3.bf16.msra.mxu0 %v611_v23 }
  0x6d   :  { %572 = vmatprep.subr.bf16.mxu0 %v612_v39 }
  0x70   :  { %573 = vmatpush3.bf16.msra.mxu0 %v612_v39 }
  0x71   :  { %574 = vmatprep.subr.bf16.mxu0 %v613_v40 }
  0x74   :  { %575 = vmatpush3.bf16.msra.mxu0 %v613_v40 }
 0x12a   :  { %v538_v25 = vpop.f32.mrb[0].mxu0 }
 0x12b   :  { %v183_v26 = vadd.f32 %v538_v25, %v461_v24  ;;  %v174_v27 = vpop.f32.mrb[1].mxu0 }
 0x12c   :  { %v175_v28 = vadd.f32 %v461_v24, %v174_v27  ;;  %v539_v29 = vpop.f32.mrb[2].mxu0 }
 0x12d   :  { %v186_v30 = vadd.f32 %v539_v29, %v461_v24  ;;  %v177_v31 = vpop.f32.mrb[3].mxu0  ;;  %v191_v33 = vmax.f32 %v183_v26, 0.0 }
 0x12e   :  { %v178_v32 = vadd.f32 %v461_v24, %v177_v31  ;;  %v189_v35 = vmax.f32 %v175_v28, 0.0 }
 0x12f   :  { %v192_v34 = vmax.f32 %v186_v30, 0.0 }
 0x130   :  { %v190_v36 = vmax.f32 %v178_v32, 0.0 }
 0x131   :  { %v194_v37 = vpack.c.bf16 %v192_v34, %v191_v33 }
 0x132   :  { %v193_v38 = vpack.c.bf16 %v190_v36, %v189_v35 }
 0x134   :  { %556 = vmatprep.mubr.bf16.mxu1 %v193_v38 }
 0x135   :  { %557 = vmatmul.mubr.bf16.vlgmr.msra.gmra.mrb[0].mxu1 %v194_v37 }
 0x208   :  { %v558_v42 = vpop.f32.mrb[0].mxu1 }
 0x209   :  { %v308_v43 = vadd.f32 %v558_v42, %v472_v41  ;;  %v299_v44 = vpop.f32.mrb[1].mxu1 }
 0x20a   :  { %v300_v45 = vadd.f32 %v472_v41, %v299_v44  ;;  %v559_v46 = vpop.f32.mrb[2].mxu1 }
 0x20b   :  { %v311_v47 = vadd.f32 %v559_v46, %v472_v41  ;;  %v302_v48 = vpop.f32.mrb[3].mxu1  ;;  %v316_v50 = vmax.f32 %v308_v43, 0.0 }
 0x20c   :  { %v303_v49 = vadd.f32 %v472_v41, %v302_v48  ;;  %v314_v52 = vmax.f32 %v300_v45, 0.0 }
 0x20d   :  { %v317_v51 = vmax.f32 %v311_v47, 0.0 }
 0x20e   :  { %v315_v53 = vmax.f32 %v303_v49, 0.0 }
 0x20f   :  { %v319_v54 = vpack.c.bf16 %v317_v51, %v316_v50 }
 0x210   :  { %v318_v55 = vpack.c.bf16 %v315_v53, %v314_v52 }
 0x212   :  { %576 = vmatprep.mubr.bf16.mxu0 %v318_v55 }
 0x213   :  { %577 = vmatmul.mubr.bf16.vlgmr.msra.gmra.mrb[4].mxu0 %v319_v54 }
 0x2e6   :  { %v578_v57 = vpop.f32.mrb[4].mxu0 }
 0x2e7   :  { %v433_v58 = vadd.f32 %v578_v57, %v481_v56  ;;  %v424_v59 = vpop.f32.mrb[5].mxu0 }
 0x2e8   :  { %v425_v60 = vadd.f32 %v481_v56, %v424_v59  ;;  %v579_v61 = vpop.f32.mrb[6].mxu0 }
 0x2e9   :  { %441 = vst [vmem:[#allocation8 + $0x10] sm:$0xff] %v433_v58  ;;  %v436_v62 = vadd.f32 %v579_v61, %v481_v56  ;;  %v427_v63 = vpop.f32.mrb[7].mxu0 }
 0x2ea   :  { %439 = vst [vmem:[#allocation8] sm:$0xff] %v425_v60  ;;  %v428_v0 = vadd.f32 %v481_v56, %v427_v63 }
 0x2eb   :  { %442 = vst [vmem:[#allocation8 + $0x18] sm:$0xff] %v436_v62 }
 0x2ec   :  { %440 = vst [vmem:[#allocation8 + $0x8] sm:$0xff] %v428_v0 }
 0x2ed   :  { %691 = shalt.err (!%p688_p0)
}
 0x2ee   :  { %s692_s25 = scalar_lea.hbm %s794_s3, 512 }
 0x2ef   :  { %p693_p1 = scmp.ne.s32.totalorder %s794_s3, %s692_s25  ;;  %p696_p2 = scmp.lt.u32.totalorder %s692_s25, %s794_s3 }
 0x2f1   :  { %p698_p3 = pnand %p696_p2, %p693_p1 }
 0x2f3   :  { %701 = shalt.err (!%p698_p3)
}
 0x2f4   :  { %s714_s30 = smov 128   ;;  %s715_s4 = smov 8  }
 0x2f5   :  { %454 = dma.vmem_to_hbm [thread:$0]  %s449_s21, 512, %s794_s3, [#allocation4], %s714_s30, %s714_s30, %s715_s4  }
 0x2f6   :  { %706 = dma.done.wait [#allocation4], 512  }
 0x2f7   :  { %707 = vsyncadd [#allocation4], 4294966784 }
 0x2f8   :  { %458 = vsyncpa [#allocation3], 1 }
 0x2f9   :  { %459 = vsyncpa [#allocation6], 1 }
 0x2fa   :  { %460 = vsyncpa [#allocation4], 1 }

</bundles_post_ra>
